<compile_context>
chip_gen: v7x
topology: tpu7x:2x2x1
jax: 0.10.0
libtpu: 0.0.40
codegen_flags: <defaults>
</compile_context>

<pallas_src>
import jax
import jax.numpy as jnp
from jax.experimental import pallas as pl
from jax.experimental.pallas import tpu as pltpu


def _hbm_copy_kernel(src_hbm, dst_hbm, sem):
    """Whole-array HBM->HBM DMA: no VMEM staging, no grid, no vector ops."""
    cp = pltpu.make_async_copy(src_hbm, dst_hbm, sem)
    cp.start()
    cp.wait()


def _dma_copy(memory):
    """Materialize a fresh HBM copy of `memory` with a single direct DMA."""
    orig_shape = memory.shape
    src = memory.reshape(1, 1) if memory.ndim == 0 else memory
    nbytes = src.size * jnp.dtype(src.dtype).itemsize
    out = pl.pallas_call(
        _hbm_copy_kernel,
        out_shape=jax.ShapeDtypeStruct(src.shape, src.dtype),
        in_specs=[pl.BlockSpec(memory_space=pl.ANY)],
        out_specs=pl.BlockSpec(memory_space=pl.ANY),
        scratch_shapes=[pltpu.SemaphoreType.DMA],
        cost_estimate=pl.CostEstimate(
            flops=0, transcendentals=0, bytes_accessed=2 * nbytes),
    )(src)
    return out.reshape(orig_shape)


def identity_readout(memory, x=None, *, alias_input=True):
    """Pallas implementation of IdentityReadout.forward(memory, x) -> memory.

    alias_input=True  -> pure pass-through (no kernel, no HBM traffic); this is
                         the module's exact semantics and the fastest option on
                         every TPU generation.
    alias_input=False -> return a freshly materialized copy of `memory`, made
                         with a single HBM->HBM DMA (no VMEM round trip).
    """
    del x  # ignored, exactly like the PyTorch module

    if alias_input:
        return memory                      # the copy would be 100% redundant

    if memory.size == 0:
        return memory                      # nothing to copy
    return _dma_copy(memory)


if __name__ == "__main__":
    key = jax.random.PRNGKey(0)
    k_mem, k_x, k_m2, k_m3 = jax.random.split(key, 4)

    # Shapes implied by the module: memory (batch=2, seq=8, hidden=32); x is an
    # arbitrary second input the module ignores.
    memory = jax.random.normal(k_mem, (2, 8, 32), dtype=jnp.float32)
    x = jax.random.normal(k_x, (2, 4, 16, 16), dtype=jnp.float32)

    # Default path: exact PyTorch semantics, zero-cost pass-through.
    out = jax.block_until_ready(identity_readout(memory, x))
    assert out.shape == memory.shape and out.dtype == memory.dtype
    assert bool(jnp.all(out == memory))

    # Explicit-copy path: exercises the Pallas HBM->HBM DMA kernel once.
    out_copy = jax.block_until_ready(identity_readout(memory, x, alias_input=False))
    assert out_copy.shape == memory.shape and out_copy.dtype == memory.dtype
    assert bool(jnp.all(out_copy == memory))

    # Lane-unfriendly trailing dim (7): layout-agnostic DMA, no masked stores.
    mem_odd = jax.random.normal(k_m2, (3, 5, 7), dtype=jnp.float32)
    out_odd = jax.block_until_ready(identity_readout(mem_odd, x, alias_input=False))
    assert bool(jnp.all(out_odd == mem_odd))

    # A larger bf16 array through the same single-DMA path.
    mem_big = jax.random.normal(k_m3, (520, 256)).astype(jnp.bfloat16)
    out_big = jax.block_until_ready(identity_readout(mem_big, None, alias_input=False))
    assert bool(jnp.all(out_big == mem_big))

    print("KERNEL_OK")
</pallas_src>

<mosaic_0001>
module attributes {stable_mosaic.version = 11 : i64} {
  func.func @_hbm_copy_kernel(%arg0: memref<2x8x32xf32, #tpu.memory_space<any>>, %arg1: memref<2x8x32xf32, #tpu.memory_space<any>>, %arg2: memref<!tpu.dma_semaphore, #tpu.memory_space<semaphore_mem>>) attributes {dimension_semantics = [], scalar_prefetch = 0 : i64, scratch_operands = 1 : i64, tpu.core_type = #tpu.core_type<tc>} {
    tpu.enqueue_dma source(%arg0 : memref<2x8x32xf32, #tpu.memory_space<any>>) target(%arg1 : memref<2x8x32xf32, #tpu.memory_space<any>>) target_semaphore(%arg2 : memref<!tpu.dma_semaphore, #tpu.memory_space<semaphore_mem>>)
    tpu.wait_dma2 semaphore(%arg2 : memref<!tpu.dma_semaphore, #tpu.memory_space<semaphore_mem>>) src(%arg0 : memref<2x8x32xf32, #tpu.memory_space<any>>) dst(%arg1 : memref<2x8x32xf32, #tpu.memory_space<any>>)
    return
  }
}

</mosaic_0001>

<bundles_post_ra>
// kernel: tpu_custom_call.1
= control target key start
LH: loop header
LB: loop body
LE: loop exit
PB: predicated region body
PF: predicated region fallthrough
CT: control target
= control target key end

     0   :  { %s35_s6 = smov [#allocation2]   ;;  %s36_s7 = smov [#allocation3]   ;;  %s54_s0 = inlined_call_operand.hbm [shape: f32[2,8,32], index: 0, kind: input, shape index: {}]   ;;  %s55_s1 = inlined_call_operand.hbm [shape: f32[2,8,32], index: 1, kind: output, shape index: {}]  }
   0x1   :  { %s37_s8 = smov 0  }
   0x2   :  { %18 = dma.general %s54_s0, 256, %s55_s1, %s35_s6, %s36_s7, [#allocation4], %s37_s8, 0  }
   0x3   :  { %33 = dma.done.wait [#allocation2], 256 }
   0x4   :  { %34 = vsyncadd [#allocation2], 4294967040 }
   0x5   :  { %23 = vsyncmov [#allocation2] }
   0x8   :  { %s24_s13 = vpop.sfrf %23 }
   0x9   :  { %p29_p0 = scmp.ne.s32.totalorder %s24_s13, 0 }
   0xb   :  { %28 = shalt.err (%p29_p0)  }

</bundles_post_ra>
